<compile_context>
chip_gen: v5e
topology: v5e:2x2
jax: 0.10.0
libtpu: 0.0.40
codegen_flags: <defaults>
</compile_context>

<pallas_src>
import functools
import math

import jax
import jax.numpy as jnp
from jax.experimental import pallas as pl
from jax.experimental.pallas import tpu as pltpu

F32 = jnp.float32
BF16 = jnp.bfloat16
_VMEM_LIMIT = 64 * 1024 * 1024
_SQRT2PI_INV = 1.0 / math.sqrt(2.0 * math.pi)
_LOG3 = math.log(3.0)
_INV_SQRT2 = 1.0 / math.sqrt(2.0)


# ----------------------------- embedding kernel -----------------------------

def _embed_kernel(xu_ref, w_ref, pe_ref, o_ref):
    # circular k=3 conv as matmul on the pre-unfolded rows, + positional embedding.
    o_ref[...] = jnp.dot(xu_ref[...].astype(BF16), w_ref[...],
                         preferred_element_type=jnp.float32) + pe_ref[...]


def embed_pallas(x_unf_flat, tok_w, pe, B, L, target_rows=512):
    M, K3 = x_unf_flat.shape           # M = B*L
    D = tok_w.shape[1]
    # rows-per-tile: a multiple of L (so PE repeats exactly) and of 8 (sublanes).
    best = 0
    for lim in (max(target_rows, 8), 8 * L):
        for bb in range(1, B + 1):
            cand = bb * L
            if cand % 8 == 0 and cand <= lim:
                best = max(best, cand)
        if best:
            break
    tm = best if best else M           # fallback: full-array block (always legal)
    reps = tm // L
    pe_t = jnp.tile(pe, (reps, 1)) if reps > 1 else pe

    return pl.pallas_call(
        _embed_kernel,
        out_shape=jax.ShapeDtypeStruct((M, D), F32),
        grid=(pl.cdiv(M, tm),),
        in_specs=[
            pl.BlockSpec((tm, K3), lambda i: (i, 0)),
            pl.BlockSpec((K3, D), lambda i: (0, 0)),
            pl.BlockSpec((tm, D), lambda i: (0, 0)),
        ],
        out_specs=pl.BlockSpec((tm, D), lambda i: (i, 0)),
        compiler_params=pltpu.CompilerParams(
            dimension_semantics=("parallel",), vmem_limit_bytes=_VMEM_LIMIT),
    )(x_unf_flat, tok_w, pe_t)


# ------------------- anomaly attention (per-head grid) kernel -------------------
# grid = (B, H).  Per step: project q/k/v/sigma for ONE head, softmax, Gaussian prior,
# attention output, and accumulate out_h @ Wo_h.  On the last head: add out-projection
# bias + residual and apply norm1, writing the post-norm1 activation.

def _attention_kernel(x_ref, nd2_ref, wq_ref, wk_ref, wv_ref, ws_ref,
                      bq_ref, bk_ref, bv_ref, bs_ref, wo_ref, bo_ref,
                      g1_ref, be1_ref,
                      x1_ref, series_ref, prior_ref, sigma_ref,
                      acc_ref, *, scale):
    h = pl.program_id(1)
    n_heads = pl.num_programs(1)

    @pl.when(h == 0)
    def _():
        acc_ref[...] = jnp.zeros_like(acc_ref)

    x = x_ref[0]                                   # (L, D) f32 (also the residual)
    xb = x.astype(BF16)

    q = jnp.dot(xb, wq_ref[0], preferred_element_type=jnp.float32) + bq_ref[0]   # (L, E)
    k = jnp.dot(xb, wk_ref[0], preferred_element_type=jnp.float32) + bk_ref[0]   # (L, E)
    v = jnp.dot(xb, wv_ref[0], preferred_element_type=jnp.float32) + bv_ref[0]   # (L, E)
    sg = jnp.sum(x * ws_ref[0], axis=-1, keepdims=True) + bs_ref[0]              # (L, 1)

    # softmax(scale * q k^T)  -> series   (scale folded into q)
    scores = jax.lax.dot_general(
        (q * scale).astype(BF16), k.astype(BF16), (((1,), (1,)), ((), ())),
        preferred_element_type=jnp.float32)                                       # (L, L)
    m = jnp.max(scores, axis=-1, keepdims=True)
    e = jnp.exp(scores - m)
    series = e * pl.reciprocal(jnp.sum(e, axis=-1, keepdims=True), approx=True)

    # sigma transform: sigmoid(5*sigma)+1e-5 ; 3**sigma - 1
    sg = jax.nn.sigmoid(sg * 5.0) + 1e-5
    sg = jnp.exp(sg * _LOG3) - 1.0
    inv_sg = 1.0 / sg                              # exact: feeds the Gaussian exp
    prior = (_SQRT2PI_INV * inv_sg) * jnp.exp(nd2_ref[...] * (inv_sg * inv_sg))   # (L, L)

    out_h = jnp.dot(series.astype(BF16), v.astype(BF16),
                    preferred_element_type=jnp.float32)                           # (L, E)
    acc_ref[...] += jnp.dot(out_h.astype(BF16), wo_ref[0],
                            preferred_element_type=jnp.float32)                   # (L, D)

    series_ref[0, 0] = series
    prior_ref[0, 0] = prior
    sigma_ref[0, 0] = jnp.broadcast_to(sg, prior.shape)

    @pl.when(h == n_heads - 1)
    def _():
        z = acc_ref[...] + bo_ref[...] + x          # out_projection bias + residual
        mu = jnp.mean(z, axis=-1, keepdims=True)
        var = jnp.mean((z - mu) * (z - mu), axis=-1, keepdims=True)
        x1_ref[0] = (z - mu) * jax.lax.rsqrt(var + 1e-5) * g1_ref[...] + be1_ref[...]


def attention_layer_pallas(x, nd2, lyr, n_heads, head_dim, scale):
    B, L, D = x.shape
    kern = functools.partial(_attention_kernel, scale=scale)
    hmap = lambda b, h: (h, 0, 0)
    bmap3 = lambda b, h: (b, 0, 0)
    const2 = lambda b, h: (0, 0)
    bh4 = lambda b, h: (b, h, 0, 0)

    out_shape = (
        jax.ShapeDtypeStruct((B, L, D), F32),                 # post-norm1 activation
        jax.ShapeDtypeStruct((B, n_heads, L, L), F32),        # series
        jax.ShapeDtypeStruct((B, n_heads, L, L), F32),        # prior
        jax.ShapeDtypeStruct((B, n_heads, L, L), F32),        # sigma (broadcast)
    )
    return pl.pallas_call(
        kern,
        out_shape=out_shape,
        grid=(B, n_heads),
        in_specs=[
            pl.BlockSpec((1, L, D), bmap3),                   # x (fetched once per b)
            pl.BlockSpec((L, L), const2),                     # -0.5*|i-j|^2
            pl.BlockSpec((1, D, head_dim), hmap),             # wq_h
            pl.BlockSpec((1, D, head_dim), hmap),             # wk_h
            pl.BlockSpec((1, D, head_dim), hmap),             # wv_h
            pl.BlockSpec((1, 1, D), hmap),                    # w_sigma_h (row vector)
            pl.BlockSpec((1, 1, head_dim), hmap),             # bq_h
            pl.BlockSpec((1, 1, head_dim), hmap),             # bk_h
            pl.BlockSpec((1, 1, head_dim), hmap),             # bv_h
            pl.BlockSpec((1, 1, 1), hmap),                    # b_sigma_h
            pl.BlockSpec((1, head_dim, D), hmap),             # wo_h
            pl.BlockSpec((1, D), const2),                     # bo
            pl.BlockSpec((1, D), const2),                     # norm1 gamma
            pl.BlockSpec((1, D), const2),                     # norm1 beta
        ],
        out_specs=(
            pl.BlockSpec((1, L, D), bmap3),
            pl.BlockSpec((1, 1, L, L), bh4),
            pl.BlockSpec((1, 1, L, L), bh4),
            pl.BlockSpec((1, 1, L, L), bh4),
        ),
        scratch_shapes=[pltpu.VMEM((L, D), F32)],
        compiler_params=pltpu.CompilerParams(
            dimension_semantics=("parallel", "arbitrary"),
            vmem_limit_bytes=_VMEM_LIMIT),
    )(x, nd2, lyr["wq"], lyr["wk"], lyr["wv"], lyr["ws"],
      lyr["bq"], lyr["bk"], lyr["bv"], lyr["bs"],
      lyr["wo"], lyr["bo"], lyr["g1"], lyr["be1"])


# ----------------------------- fused FFN kernel -----------------------------
# norm2(x1 + conv2(gelu(conv1(x1)))) in one kernel; the (tm, d_ff) intermediate stays in VMEM.

def _ffn_kernel(x1_ref, w1_ref, b1_ref, w2_ref, b2_ref, g_ref, be_ref, o_ref):
    x1 = x1_ref[...]
    y = jnp.dot(x1.astype(BF16), w1_ref[...],
                preferred_element_type=jnp.float32) + b1_ref[...]
    y = 0.5 * y * (1.0 + jax.lax.erf(y * _INV_SQRT2))                 # exact GELU
    z = jnp.dot(y.astype(BF16), w2_ref[...],
                preferred_element_type=jnp.float32) + b2_ref[...] + x1
    mu = jnp.mean(z, axis=-1, keepdims=True)
    var = jnp.mean((z - mu) * (z - mu), axis=-1, keepdims=True)
    o_ref[...] = (z - mu) * jax.lax.rsqrt(var + 1e-5) * g_ref[...] + be_ref[...]


def ffn_ln_pallas(x1, w1, b1, w2, b2, gamma, beta, tm=512):
    M, D = x1.shape
    Fd = w1.shape[1]
    tm = min(tm, M)
    return pl.pallas_call(
        _ffn_kernel,
        out_shape=jax.ShapeDtypeStruct((M, D), F32),
        grid=(pl.cdiv(M, tm),),
        in_specs=[
            pl.BlockSpec((tm, D), lambda i: (i, 0)),
            pl.BlockSpec((D, Fd), lambda i: (0, 0)),
            pl.BlockSpec((1, Fd), lambda i: (0, 0)),
            pl.BlockSpec((Fd, D), lambda i: (0, 0)),
            pl.BlockSpec((1, D), lambda i: (0, 0)),
            pl.BlockSpec((1, D), lambda i: (0, 0)),
            pl.BlockSpec((1, D), lambda i: (0, 0)),
        ],
        out_specs=pl.BlockSpec((tm, D), lambda i: (i, 0)),
        compiler_params=pltpu.CompilerParams(
            dimension_semantics=("parallel",), vmem_limit_bytes=_VMEM_LIMIT),
    )(x1, w1, b1, w2, b2, gamma, beta)


# --------------------- final LayerNorm + projection kernel ---------------------
# LN as a prologue before the projection matmul; projection width padded to 128 lanes
# for a lane-dense output store (sliced to c_out in the wrapper).

def _ln_proj_kernel(x_ref, g_ref, b_ref, wp_ref, bp_ref, o_ref):
    z = x_ref[...]
    mu = jnp.mean(z, axis=-1, keepdims=True)
    var = jnp.mean((z - mu) * (z - mu), axis=-1, keepdims=True)
    zn = (z - mu) * jax.lax.rsqrt(var + 1e-5) * g_ref[...] + b_ref[...]
    o_ref[...] = jnp.dot(zn.astype(BF16), wp_ref[...],
                         preferred_element_type=jnp.float32) + bp_ref[...]


def ln_proj_pallas(x, gamma, beta, wp, bp, tm=512):
    M, D = x.shape
    Np = wp.shape[1]
    tm = min(tm, M)
    return pl.pallas_call(
        _ln_proj_kernel,
        out_shape=jax.ShapeDtypeStruct((M, Np), F32),
        grid=(pl.cdiv(M, tm),),
        in_specs=[
            pl.BlockSpec((tm, D), lambda i: (i, 0)),
            pl.BlockSpec((1, D), lambda i: (0, 0)),
            pl.BlockSpec((1, D), lambda i: (0, 0)),
            pl.BlockSpec((D, Np), lambda i: (0, 0)),
            pl.BlockSpec((1, Np), lambda i: (0, 0)),
        ],
        out_specs=pl.BlockSpec((tm, Np), lambda i: (i, 0)),
        compiler_params=pltpu.CompilerParams(
            dimension_semantics=("parallel",), vmem_limit_bytes=_VMEM_LIMIT),
    )(x, gamma, beta, wp, bp)


# ----------------------------- parameter setup -----------------------------

def positional_embedding(L, d_model):
    position = jnp.arange(L, dtype=F32)[:, None]
    div_term = jnp.exp(jnp.arange(0, d_model, 2, dtype=F32) * (-math.log(10000.0) / d_model))
    pe = jnp.zeros((L, d_model), F32)
    pe = pe.at[:, 0::2].set(jnp.sin(position * div_term))
    pe = pe.at[:, 1::2].set(jnp.cos(position * div_term))
    return pe


def init_params(key, *, L, enc_in, d_model, n_heads, e_layers, d_ff, c_out):
    E = d_model // n_heads
    keys = iter(jax.random.split(key, 16 * e_layers + 16))

    def wmat(shape, scale=0.05):                 # matmul weights stored bf16 (MXU inputs)
        return (jax.random.normal(next(keys), shape, F32) * scale).astype(BF16)

    def vec(shape, scale=0.05):                  # biases / LN params stay f32
        return jax.random.normal(next(keys), shape, F32) * scale

    params = dict(d_model=d_model, n_heads=n_heads, c_out=c_out)
    # TokenEmbedding: Conv1d(enc_in, d_model, k=3, circular, bias=False) as (3*enc_in, d_model)
    # TODO(synk): to load real torch conv weights, lay out tok_w tap-major/channel-minor:
    #   weight.permute(2, 1, 0).reshape(3*enc_in, d_model)
    params["tok_w"] = wmat((3 * enc_in, d_model))
    params["pe"] = positional_embedding(L, d_model)
    idx = jnp.arange(L, dtype=F32)
    dist = jnp.abs(idx[:, None] - idx[None, :])
    params["nd2"] = -0.5 * dist * dist            # precomputed -0.5*|i-j|^2

    layers = []
    for _ in range(e_layers):
        layers.append(dict(
            wq=wmat((n_heads, d_model, E)), bq=vec((n_heads, 1, E)),
            wk=wmat((n_heads, d_model, E)), bk=vec((n_heads, 1, E)),
            wv=wmat((n_heads, d_model, E)), bv=vec((n_heads, 1, E)),
            ws=vec((n_heads, 1, d_model)), bs=vec((n_heads, 1, 1)),
            wo=wmat((n_heads, E, d_model)), bo=vec((1, d_model)),
            g1=jnp.ones((1, d_model), F32), be1=jnp.zeros((1, d_model), F32),
            wc1=wmat((d_model, d_ff)), bc1=vec((1, d_ff)),
            wc2=wmat((d_ff, d_model)), bc2=vec((1, d_model)),
            g2=jnp.ones((1, d_model), F32), be2=jnp.zeros((1, d_model), F32),
        ))
    params["layers"] = layers
    params["gf"] = jnp.ones((1, d_model), F32)
    params["bf"] = jnp.zeros((1, d_model), F32)

    # projection padded to a lane-dense 128-wide output slab
    n_pad = max(128, ((c_out + 127) // 128) * 128)
    wp = jnp.zeros((d_model, n_pad), F32)
    wp = wp.at[:, :c_out].set(jax.random.normal(next(keys), (d_model, c_out), F32) * 0.05)
    params["wp"] = wp.astype(BF16)
    bp = jnp.zeros((1, n_pad), F32)
    bp = bp.at[:, :c_out].set(jax.random.normal(next(keys), (1, c_out), F32) * 0.05)
    params["bp"] = bp
    return params


# ----------------------------- forward pass -----------------------------

def model_forward(params, x):
    B, L, C = x.shape
    D = params["d_model"]
    H = params["n_heads"]
    E = D // H
    scale = 1.0 / math.sqrt(E)

    # --- DataEmbedding: circular-pad + unfold (plain JAX prep), conv-as-matmul + PE kernel ---
    x_pad = jnp.concatenate([x[:, -1:, :], x, x[:, :1, :]], axis=1)            # (B, L+2, C)
    unf = jnp.concatenate([x_pad[:, t:t + L, :] for t in range(3)], axis=-1)   # (B, L, 3C)
    h = embed_pallas(unf.reshape(B * L, 3 * C), params["tok_w"], params["pe"], B, L)
    h = h.reshape(B, L, D)

    series_list, prior_list, sigma_list = [], [], []

    # --- Encoder layers ---
    for lyr in params["layers"]:
        # per-head projections + attention + out_projection + residual + norm1 (one kernel)
        x1, series, prior, sigma = attention_layer_pallas(
            h, params["nd2"], lyr, H, E, scale)
        # FFN: conv1 + gelu + conv2 + residual + norm2 (one kernel, no d_ff HBM round trip)
        h = ffn_ln_pallas(x1.reshape(B * L, D), lyr["wc1"], lyr["bc1"],
                          lyr["wc2"], lyr["bc2"], lyr["g2"], lyr["be2"]).reshape(B, L, D)
        series_list.append(series)
        prior_list.append(prior)
        sigma_list.append(sigma)

    # --- final encoder norm fused with the output projection (lane-dense padded store) ---
    enc = ln_proj_pallas(h.reshape(B * L, D), params["gf"], params["bf"],
                         params["wp"], params["bp"])
    enc_out = enc[:, :params["c_out"]].reshape(B, L, params["c_out"])

    # output_attention=True
    return enc_out, series_list, prior_list, sigma_list


# ----------------------------- main -----------------------------

if __name__ == "__main__":
    B, L, enc_in = 2, 8, 4
    d_model, n_heads, e_layers, d_ff, c_out = 32, 4, 2, 64, 4

    key = jax.random.PRNGKey(0)
    pkey, xkey = jax.random.split(key)
    params = init_params(pkey, L=L, enc_in=enc_in, d_model=d_model,
                         n_heads=n_heads, e_layers=e_layers, d_ff=d_ff, c_out=c_out)
    x = jax.random.normal(xkey, (B, L, enc_in), F32)

    enc_out, series, prior, sigmas = model_forward(params, x)
    jax.block_until_ready(enc_out)
    for t in series + prior + sigmas:
        jax.block_until_ready(t)

    assert enc_out.shape == (B, L, c_out)
    assert all(s.shape == (B, n_heads, L, L) for s in series + prior + sigmas)
    print("KERNEL_OK")
</pallas_src>

<mosaic_0001>
module attributes {stable_mosaic.version = 11 : i64} {
  func.func @_embed_kernel(%arg0: i32, %arg1: memref<16x12xf32, #tpu.memory_space<vmem>>, %arg2: memref<12x32xbf16, #tpu.memory_space<vmem>>, %arg3: memref<16x32xf32, #tpu.memory_space<vmem>>, %arg4: memref<16x32xf32, #tpu.memory_space<vmem>>) attributes {dimension_semantics = [#tpu.dimension_semantics<parallel>], iteration_bounds = array<i64: 1>, scalar_prefetch = 0 : i64, scratch_operands = 0 : i64, tpu.core_type = #tpu.core_type<tc>, window_params = [{transform_indices = @transform_0, window_bounds = array<i64: 16, 12>}, {pipeline_mode = #tpu.pipeline_mode<synchronous>, transform_indices = @transform_1, window_bounds = array<i64: 12, 32>}, {pipeline_mode = #tpu.pipeline_mode<synchronous>, transform_indices = @transform_2, window_bounds = array<i64: 16, 32>}, {transform_indices = @transform_3, window_bounds = array<i64: 16, 32>}]} {
    %c0 = arith.constant 0 : index
    %c0_0 = arith.constant 0 : index
    %0 = vector.load %arg1[%c0, %c0_0] : memref<16x12xf32, #tpu.memory_space<vmem>>, vector<16x12xf32>
    %1 = arith.truncf %0 : vector<16x12xf32> to vector<16x12xbf16>
    %c0_1 = arith.constant 0 : index
    %c0_2 = arith.constant 0 : index
    %2 = vector.load %arg2[%c0_1, %c0_2] : memref<12x32xbf16, #tpu.memory_space<vmem>>, vector<12x32xbf16>
    %cst = arith.constant dense<0.000000e+00> : vector<16x32xf32>
    %3 = tpu.matmul %1, %2, %cst {dimension_numbers = #tpu.dot_dimension_numbers<[1], [0], [0], [1], [0, 0, 1, 1], [], []>} : vector<16x12xbf16>, vector<12x32xbf16>, vector<16x32xf32> -> vector<16x32xf32>
    %c0_3 = arith.constant 0 : index
    %c0_4 = arith.constant 0 : index
    %4 = vector.load %arg3[%c0_3, %c0_4] : memref<16x32xf32, #tpu.memory_space<vmem>>, vector<16x32xf32>
    %5 = arith.addf %3, %4 : vector<16x32xf32>
    %c0_5 = arith.constant 0 : index
    %c0_6 = arith.constant 0 : index
    %6 = vector.load %arg4[%c0_5, %c0_6] : memref<16x32xf32, #tpu.memory_space<vmem>>, vector<16x32xf32>
    tpu.vector_store %arg4[%c0_5, %c0_6], %5 {strides = array<i32>} : memref<16x32xf32, #tpu.memory_space<vmem>>, vector<16x32xf32>,
    return
  }
  func.func @transform_0(%arg0: i32) -> (i32, i32) {
    %c0_i32 = arith.constant 0 : i32
    %c0_i32_0 = arith.constant 0 : i32
    return %arg0, %c0_i32 : i32, i32
  }
  func.func @transform_1(%arg0: i32) -> (i32, i32) {
    %c0_i32 = arith.constant 0 : i32
    %c0_i32_0 = arith.constant 0 : i32
    %c0_i32_1 = arith.constant 0 : i32
    return %c0_i32, %c0_i32_0 : i32, i32
  }
  func.func @transform_2(%arg0: i32) -> (i32, i32) {
    %c0_i32 = arith.constant 0 : i32
    %c0_i32_0 = arith.constant 0 : i32
    %c0_i32_1 = arith.constant 0 : i32
    return %c0_i32, %c0_i32_0 : i32, i32
  }
  func.func @transform_3(%arg0: i32) -> (i32, i32) {
    %c0_i32 = arith.constant 0 : i32
    %c0_i32_0 = arith.constant 0 : i32
    return %arg0, %c0_i32 : i32, i32
  }
}

</mosaic_0001>

<bundles_post_ra>
// kernel: tpu_custom_call.1
= control target key start
LH: loop header
LB: loop body
LE: loop exit
PB: predicated region body
PF: predicated region fallthrough
CT: control target
= control target key end

     0   :  { %8 = vsyncpa [#allocation3], 0  ;;  %s285_s0 = inlined_call_operand.hbm [shape: f32[16,12], index: 0, kind: input, shape index: {}]   ;;  %s286_s1 = inlined_call_operand.hbm [shape: bf16[12,32], index: 1, kind: input, shape index: {}]   ;;  %s287_s2 = inlined_call_operand.hbm [shape: f32[16,32], index: 2, kind: input, shape index: {}]   ;;  %s288_s3 = inlined_call_operand.hbm [shape: f32[16,32], index: 3, kind: output, shape index: {}]  }
   0x1   :  { %9 = vsyncpa [#allocation6], 0  ;;  %s28_s14 = sshll.u32 %s286_s1, 4  ;;  %s29_s14 = int_to_ptr.hbm [resolvable:$true] %s28_s14 }
   0x2   :  { %10 = vsyncpa [#allocation4], 0  ;;  %s236_s15 = smov [#allocation5]   ;;  %s15_s19 = sshll.u32 %s285_s0, 4  ;;  %s16_s19 = int_to_ptr.hbm [resolvable:$true] %s15_s19 }
   0x3   :  { %s30_s16 = sshll.u32 %s236_s15, 4  ;;  %s237_s20 = smov 64   ;;  %s31_s16 = int_to_ptr.vmem [resolvable:$true] %s30_s16 }
   0x4   :  { %s238_s21 = smov 4   ;;  %s239_s22 = smov [#allocation2]  }
   0x5   :  { %36 = dma.hbm_to_vmem [thread:$0]  %s29_s14, 128, %s31_s16, [#allocation6], %s237_s20, %s237_s20, %s238_s21  }
   0x6   :  { %s17_s23 = sshll.u32 %s239_s22, 4  ;;  %s240_s24 = smov 128   ;;  %s18_s23 = int_to_ptr.vmem [resolvable:$true] %s17_s23 }
   0x7   :  { %s241_s25 = smov 8   ;;  %s41_s27 = sshll.u32 %s287_s2, 4  ;;  %s42_s27 = int_to_ptr.hbm [resolvable:$true] %s41_s27 }
   0x8   :  { %23 = dma.hbm_to_vmem [thread:$0]  %s16_s19, 256, %s18_s23, [#allocation3], %s240_s24, %s240_s24, %s241_s25  }
   0x9   :  { %s242_s28 = smov [#allocation7]  }
   0xa   :  { %s43_s0 = sshll.u32 %s242_s28, 4  ;;  %s44_s0 = int_to_ptr.vmem [resolvable:$true] %s43_s0 }
   0xb   :  { %49 = dma.hbm_to_vmem [thread:$0]  %s42_s27, 256, %s44_s0, [#allocation6], %s240_s24, %s240_s24, %s241_s25  }
   0xc   :  { %230 = dma.done.wait [#allocation3], 256  }
   0xd   :  { %231 = vsyncadd [#allocation3], 4294967040 }
   0xe   :  { %232 = dma.done.wait [#allocation6], 384  }
   0xf   :  { %233 = vsyncadd [#allocation6], 4294966912  ;;  %v122_v0 = vld [vmem:[#allocation5] sm:$0xf]  ;;  %v125_v1 = vld [vmem:[#allocation5] sm:$0x30] }
  0x10   :  { %vm79_vm0 = vcmask 1045504   ;;  %v63_v2 = vld [vmem:[#allocation2] sm:$0xff]  ;;  %v123_v3 = vor.u32 %v125_v1, %v122_v0  ;;  %v64_v4 = vld [vmem:[#allocation2 + $0x8] sm:$0xff]  ;;  %vm75_vm1 = vcmask 97280   ;;  %v68_v7 = vld [vmem:[#allocation7] sm:$0xff]  ;;  %vm97_vm2 = vcmask 261120  }
  0x11   :  { %v65_v6 = vpack.c.bf16 %v64_v4, %v63_v2  ;;  %v69_v10 = vld [vmem:[#allocation7 + $0x8] sm:$0xff]  ;;  %s243_s2 = smov [#allocation8]   ;;  %s106_s5 = sshll.u32 %s288_s3, 4  ;;  %s107_s5 = int_to_ptr.hbm [resolvable:$true] %s106_s5 }
  0x12   :  { %v81_v5 = vsel %vm79_vm0, %v123_v3, 0  ;;  %s104_s29 = sshll.u32 %s243_s2, 4  ;;  %s105_s29 = int_to_ptr.vmem [resolvable:$true] %s104_s29 }
  0x13   :  { %90 = vmatpush.bf16.msra.mxu0 %v81_v5 }
  0x16   :  { %124 = vmatmul.msk.bf16.vlgmr.msra.gmra.mxu0 %vm75_vm1, %v65_v6 }
  0x93   :  { %v92_v8 = vpop.f32.mrf.mxu0 }
  0x94   :  { %v93_v9 = vadd.f32 %v92_v8, %v68_v7 }
  0x96   :  { %98 = vst.msk [vmem:[#allocation8] sm:$0xff] %vm97_vm2, %v93_v9 }
  0x9b   :  { %v94_v11 = vpop.f32.mrf.mxu0 }
  0x9c   :  { %v95_v12 = vadd.f32 %v94_v11, %v69_v10 }
  0x9e   :  { %99 = vst.msk [vmem:[#allocation8 + $0x8] sm:$0xff] %vm97_vm2, %v95_v12 }
  0x9f   :  { %112 = dma.vmem_to_hbm [thread:$0]  %s105_s29, 256, %s107_s5, [#allocation4], %s240_s24, %s240_s24, %s241_s25  }
  0xa0   :  { %234 = dma.done.wait [#allocation4], 256  }
  0xa1   :  { %235 = vsyncadd [#allocation4], 4294967040 }
  0xa2   :  { %117 = vsyncpa [#allocation3], 1 }
  0xa3   :  { %118 = vsyncpa [#allocation6], 1 }
  0xa4   :  { %119 = vsyncpa [#allocation4], 1 }

</bundles_post_ra>
